<compile_context>
chip_gen: v7x
topology: tpu7x:2x2x1
jax: 0.10.0
libtpu: 0.0.40
codegen_flags: <defaults>
</compile_context>

<pallas_src>
import functools

import jax
import jax.numpy as jnp
from jax import lax
from jax.experimental import pallas as pl
from jax.experimental.pallas import tpu as pltpu


def rnn_fused_kernel(seq_len, batch_pad,
                     tok_ref, emb_ref, wih_ref, whh_ref, b_ref, wfc_ref, bfc_ref,
                     y_ref, hout_ref, h_all):
    """Single-invocation fused RNN forward.

    tok_ref: (S*Bp, 1)  int32 token ids, time-major (batch padded to Bp)
    emb_ref: (Vp, H)    embedding table, vocab padded to a 128-lane multiple
    wih_ref: (H, H)     input->hidden weight, pre-transposed (x @ W)
    whh_ref: (H, H)     hidden->hidden weight, pre-transposed (h @ W)
    b_ref:   (1, H)     combined bias (b_ih + b_hh)
    wfc_ref: (H, O)     fc weight, pre-transposed
    bfc_ref: (1, O)     fc bias
    y_ref:   (S*Bp, O)  per-step logits (one slab store)
    hout_ref:(Bp, H)    final hidden state (written once)
    h_all:   (S*Bp, H)  VMEM scratch holding every step's hidden state
    """
    S, Bp = seq_len, batch_pad
    SB = S * Bp
    Vp = emb_ref.shape[0]

    # Fused embedding lookup: one-hot(tokens) @ table on the MXU.
    tok = tok_ref[...]                                                # (SB, 1)
    vocab_iota = lax.broadcasted_iota(jnp.int32, (SB, Vp), 1)         # (SB, Vp)
    onehot = (vocab_iota == tok).astype(jnp.float32)                  # (SB, Vp)
    x = jnp.dot(onehot, emb_ref[...],
                preferred_element_type=jnp.float32)                   # (SB, H)

    # Hoisted input projection + combined bias: one matmul for all timesteps.
    pre_x = (jnp.dot(x, wih_ref[...], preferred_element_type=jnp.float32)
             + b_ref[...])                                            # (SB, H)

    whh = whh_ref[...]

    # Step 0: h_prev == 0, so skip the h @ W_hh matmul entirely.
    h = jnp.tanh(pre_x[0:Bp, :])
    h_all[0:Bp, :] = h

    # Sequential recurrence, fully unrolled at trace time (S is static).
    # Only h @ W_hh + tanh sit on the dependent chain.
    for t in range(1, S):
        lo = t * Bp
        pre = pre_x[lo:lo + Bp, :] + jnp.dot(h, whh,
                                             preferred_element_type=jnp.float32)
        h = jnp.tanh(pre)
        h_all[lo:lo + Bp, :] = h

    # Hoisted FC projection: one matmul over all steps, one slab store.
    y_ref[...] = (jnp.dot(h_all[...], wfc_ref[...],
                          preferred_element_type=jnp.float32)
                  + bfc_ref[...]).astype(y_ref.dtype)

    # Final hidden, written exactly once.
    hout_ref[...] = h.astype(hout_ref.dtype)


def init_params(key, input_size, hidden_size, output_size):
    """Deterministic parameter init mimicking PyTorch defaults."""
    ks = jax.random.split(key, 7)
    h = hidden_size
    bound = 1.0 / jnp.sqrt(h)
    return {
        # nn.Embedding: N(0, 1)
        "embedding": jax.random.normal(ks[0], (input_size, h), jnp.float32),
        # nn.RNN weights, stored pre-transposed for x @ W / h @ W
        "w_ih": jax.random.uniform(ks[1], (h, h), jnp.float32, -bound, bound),
        "w_hh": jax.random.uniform(ks[2], (h, h), jnp.float32, -bound, bound),
        "b_ih": jax.random.uniform(ks[3], (h,), jnp.float32, -bound, bound),
        "b_hh": jax.random.uniform(ks[4], (h,), jnp.float32, -bound, bound),
        # nn.Linear, pre-transposed (H, O)
        "w_fc": jax.random.uniform(ks[5], (h, output_size), jnp.float32, -bound, bound),
        "b_fc": jax.random.uniform(ks[6], (output_size,), jnp.float32, -bound, bound),
    }


def vanilla_rnn_forward(tokens, params, hidden_size, output_size):
    """tokens: (B, S) int32. Returns (output (B,S,O), hidden (1,B,H))."""
    B, S = tokens.shape
    H, O = hidden_size, output_size
    V = params["embedding"].shape[0]

    if S == 0:  # guard: the kernel assumes at least one timestep
        return (jnp.zeros((B, 0, O), jnp.float32),
                jnp.zeros((1, B, H), jnp.float32))

    # Pad batch to a multiple of 8 sublanes so per-step slices are tile-aligned,
    # and vocab to a multiple of 128 lanes for the one-hot matmul.
    Bp = max(8, ((B + 7) // 8) * 8)
    Vp = max(128, ((V + 127) // 128) * 128)

    # Cheap int32 glue: time-major token ids, batch-padded (pad rows -> id 0).
    tok_sb = jnp.transpose(tokens.astype(jnp.int32), (1, 0))      # (S, B)
    tok_pad = jnp.pad(tok_sb, ((0, 0), (0, Bp - B)))               # (S, Bp)
    tok_flat = tok_pad.reshape(S * Bp, 1)                          # (S*Bp, 1)

    emb_pad = jnp.pad(params["embedding"].astype(jnp.float32),
                      ((0, Vp - V), (0, 0)))                       # (Vp, H)
    b_comb = (params["b_ih"] + params["b_hh"]).reshape(1, H)
    b_fc = params["b_fc"].reshape(1, O)

    kernel = functools.partial(rnn_fused_kernel, S, Bp)

    y_flat, h_final = pl.pallas_call(
        kernel,
        out_shape=(
            jax.ShapeDtypeStruct((S * Bp, O), jnp.float32),
            jax.ShapeDtypeStruct((Bp, H), jnp.float32),
        ),
        scratch_shapes=[pltpu.VMEM((S * Bp, H), jnp.float32)],
    )(tok_flat, emb_pad, params["w_ih"], params["w_hh"], b_comb,
      params["w_fc"], b_fc)

    y = y_flat.reshape(S, Bp, O)[:, :B, :]        # drop batch padding
    output = jnp.transpose(y, (1, 0, 2))          # (B, S, O) — batch_first=True
    hidden = h_final[:B][None]                    # (1, B, H) — nn.RNN hidden
    return output, hidden


if __name__ == "__main__":
    input_size = 50   # vocab
    hidden_size = 32
    output_size = 16
    B, S = 2, 8

    key = jax.random.PRNGKey(0)
    k_params, k_tok = jax.random.split(key)
    params = init_params(k_params, input_size, hidden_size, output_size)
    tokens = jax.random.randint(k_tok, (B, S), 0, input_size, dtype=jnp.int32)

    fwd = jax.jit(lambda t: vanilla_rnn_forward(t, params, hidden_size, output_size))
    output, hidden = fwd(tokens)
    jax.block_until_ready((output, hidden))

    assert output.shape == (B, S, output_size)
    assert hidden.shape == (1, B, hidden_size)
    assert bool(jnp.all(jnp.isfinite(output))) and bool(jnp.all(jnp.isfinite(hidden)))
    print("KERNEL_OK")
</pallas_src>

<mosaic_0001>
module attributes {stable_mosaic.version = 11 : i64} {
  func.func @rnn_fused_kernel(%arg0: memref<64x1xi32, #tpu.memory_space<vmem>>, %arg1: memref<128x32xf32, #tpu.memory_space<vmem>>, %arg2: memref<32x32xf32, #tpu.memory_space<vmem>>, %arg3: memref<32x32xf32, #tpu.memory_space<vmem>>, %arg4: memref<1x32xf32, #tpu.memory_space<vmem>>, %arg5: memref<32x16xf32, #tpu.memory_space<vmem>>, %arg6: memref<1x16xf32, #tpu.memory_space<vmem>>, %arg7: memref<64x16xf32, #tpu.memory_space<vmem>>, %arg8: memref<8x32xf32, #tpu.memory_space<vmem>>, %arg9: memref<64x32xf32, #tpu.memory_space<vmem>>) attributes {dimension_semantics = [], scalar_prefetch = 0 : i64, scratch_operands = 1 : i64, tpu.core_type = #tpu.core_type<tc>} {
    %c0 = arith.constant 0 : index
    %c0_0 = arith.constant 0 : index
    %0 = vector.load %arg0[%c0, %c0_0] : memref<64x1xi32, #tpu.memory_space<vmem>>, vector<64x1xi32>
    %1 = tpu.iota {dimensions = array<i32: 1>} : vector<64x128xi32>
    %2 = vector.broadcast %0 : vector<64x1xi32> to vector<64x128xi32>
    %3 = arith.cmpi eq, %1, %2 : vector<64x128xi32>
    %4 = arith.extui %3 : vector<64x128xi1> to vector<64x128xi32>
    %5 = arith.sitofp %4 : vector<64x128xi32> to vector<64x128xf32>
    %c0_1 = arith.constant 0 : index
    %c0_2 = arith.constant 0 : index
    %6 = vector.load %arg1[%c0_1, %c0_2] : memref<128x32xf32, #tpu.memory_space<vmem>>, vector<128x32xf32>
    %cst = arith.constant dense<0.000000e+00> : vector<64x32xf32>
    %7 = tpu.matmul %5, %6, %cst {dimension_numbers = #tpu.dot_dimension_numbers<[1], [0], [0], [1], [0, 0, 1, 1], [], []>} : vector<64x128xf32>, vector<128x32xf32>, vector<64x32xf32> -> vector<64x32xf32>
    %c0_3 = arith.constant 0 : index
    %c0_4 = arith.constant 0 : index
    %8 = vector.load %arg2[%c0_3, %c0_4] : memref<32x32xf32, #tpu.memory_space<vmem>>, vector<32x32xf32>
    %cst_5 = arith.constant dense<0.000000e+00> : vector<64x32xf32>
    %9 = tpu.matmul %7, %8, %cst_5 {dimension_numbers = #tpu.dot_dimension_numbers<[1], [0], [0], [1], [0, 0, 1, 1], [], []>} : vector<64x32xf32>, vector<32x32xf32>, vector<64x32xf32> -> vector<64x32xf32>
    %c0_6 = arith.constant 0 : index
    %c0_7 = arith.constant 0 : index
    %10 = vector.load %arg4[%c0_6, %c0_7] : memref<1x32xf32, #tpu.memory_space<vmem>>, vector<1x32xf32>
    %11 = vector.broadcast %10 : vector<1x32xf32> to vector<64x32xf32>
    %12 = arith.addf %9, %11 : vector<64x32xf32>
    %c0_8 = arith.constant 0 : index
    %c0_9 = arith.constant 0 : index
    %13 = vector.load %arg3[%c0_8, %c0_9] : memref<32x32xf32, #tpu.memory_space<vmem>>, vector<32x32xf32>
    %14 = vector.extract_strided_slice %12 {offsets = [0, 0], sizes = [8, 32], strides = [1, 1]} : vector<64x32xf32> to vector<8x32xf32>
    %15 = math.tanh %14 : vector<8x32xf32>
    %c0_10 = arith.constant 0 : index
    %c0_11 = arith.constant 0 : index
    %16 = vector.load %arg9[%c0_10, %c0_11] : memref<64x32xf32, #tpu.memory_space<vmem>>, vector<8x32xf32>
    tpu.vector_store %arg9[%c0_10, %c0_11], %15 {strides = array<i32>} : memref<64x32xf32, #tpu.memory_space<vmem>>, vector<8x32xf32>,
    %17 = vector.extract_strided_slice %12 {offsets = [8, 0], sizes = [8, 32], strides = [1, 1]} : vector<64x32xf32> to vector<8x32xf32>
    %cst_12 = arith.constant dense<0.000000e+00> : vector<8x32xf32>
    %18 = tpu.matmul %15, %13, %cst_12 {dimension_numbers = #tpu.dot_dimension_numbers<[1], [0], [0], [1], [0, 0, 1, 1], [], []>} : vector<8x32xf32>, vector<32x32xf32>, vector<8x32xf32> -> vector<8x32xf32>
    %19 = arith.addf %17, %18 : vector<8x32xf32>
    %20 = math.tanh %19 : vector<8x32xf32>
    %c8 = arith.constant 8 : index
    %c0_13 = arith.constant 0 : index
    %21 = vector.load %arg9[%c8, %c0_13] : memref<64x32xf32, #tpu.memory_space<vmem>>, vector<8x32xf32>
    tpu.vector_store %arg9[%c8, %c0_13], %20 {strides = array<i32>} : memref<64x32xf32, #tpu.memory_space<vmem>>, vector<8x32xf32>,
    %22 = vector.extract_strided_slice %12 {offsets = [16, 0], sizes = [8, 32], strides = [1, 1]} : vector<64x32xf32> to vector<8x32xf32>
    %cst_14 = arith.constant dense<0.000000e+00> : vector<8x32xf32>
    %23 = tpu.matmul %20, %13, %cst_14 {dimension_numbers = #tpu.dot_dimension_numbers<[1], [0], [0], [1], [0, 0, 1, 1], [], []>} : vector<8x32xf32>, vector<32x32xf32>, vector<8x32xf32> -> vector<8x32xf32>
    %24 = arith.addf %22, %23 : vector<8x32xf32>
    %25 = math.tanh %24 : vector<8x32xf32>
    %c16 = arith.constant 16 : index
    %c0_15 = arith.constant 0 : index
    %26 = vector.load %arg9[%c16, %c0_15] : memref<64x32xf32, #tpu.memory_space<vmem>>, vector<8x32xf32>
    tpu.vector_store %arg9[%c16, %c0_15], %25 {strides = array<i32>} : memref<64x32xf32, #tpu.memory_space<vmem>>, vector<8x32xf32>,
    %27 = vector.extract_strided_slice %12 {offsets = [24, 0], sizes = [8, 32], strides = [1, 1]} : vector<64x32xf32> to vector<8x32xf32>
    %cst_16 = arith.constant dense<0.000000e+00> : vector<8x32xf32>
    %28 = tpu.matmul %25, %13, %cst_16 {dimension_numbers = #tpu.dot_dimension_numbers<[1], [0], [0], [1], [0, 0, 1, 1], [], []>} : vector<8x32xf32>, vector<32x32xf32>, vector<8x32xf32> -> vector<8x32xf32>
    %29 = arith.addf %27, %28 : vector<8x32xf32>
    %30 = math.tanh %29 : vector<8x32xf32>
    %c24 = arith.constant 24 : index
    %c0_17 = arith.constant 0 : index
    %31 = vector.load %arg9[%c24, %c0_17] : memref<64x32xf32, #tpu.memory_space<vmem>>, vector<8x32xf32>
    tpu.vector_store %arg9[%c24, %c0_17], %30 {strides = array<i32>} : memref<64x32xf32, #tpu.memory_space<vmem>>, vector<8x32xf32>,
    %32 = vector.extract_strided_slice %12 {offsets = [32, 0], sizes = [8, 32], strides = [1, 1]} : vector<64x32xf32> to vector<8x32xf32>
    %cst_18 = arith.constant dense<0.000000e+00> : vector<8x32xf32>
    %33 = tpu.matmul %30, %13, %cst_18 {dimension_numbers = #tpu.dot_dimension_numbers<[1], [0], [0], [1], [0, 0, 1, 1], [], []>} : vector<8x32xf32>, vector<32x32xf32>, vector<8x32xf32> -> vector<8x32xf32>
    %34 = arith.addf %32, %33 : vector<8x32xf32>
    %35 = math.tanh %34 : vector<8x32xf32>
    %c32 = arith.constant 32 : index
    %c0_19 = arith.constant 0 : index
    %36 = vector.load %arg9[%c32, %c0_19] : memref<64x32xf32, #tpu.memory_space<vmem>>, vector<8x32xf32>
    tpu.vector_store %arg9[%c32, %c0_19], %35 {strides = array<i32>} : memref<64x32xf32, #tpu.memory_space<vmem>>, vector<8x32xf32>,
    %37 = vector.extract_strided_slice %12 {offsets = [40, 0], sizes = [8, 32], strides = [1, 1]} : vector<64x32xf32> to vector<8x32xf32>
    %cst_20 = arith.constant dense<0.000000e+00> : vector<8x32xf32>
    %38 = tpu.matmul %35, %13, %cst_20 {dimension_numbers = #tpu.dot_dimension_numbers<[1], [0], [0], [1], [0, 0, 1, 1], [], []>} : vector<8x32xf32>, vector<32x32xf32>, vector<8x32xf32> -> vector<8x32xf32>
    %39 = arith.addf %37, %38 : vector<8x32xf32>
    %40 = math.tanh %39 : vector<8x32xf32>
    %c40 = arith.constant 40 : index
    %c0_21 = arith.constant 0 : index
    %41 = vector.load %arg9[%c40, %c0_21] : memref<64x32xf32, #tpu.memory_space<vmem>>, vector<8x32xf32>
    tpu.vector_store %arg9[%c40, %c0_21], %40 {strides = array<i32>} : memref<64x32xf32, #tpu.memory_space<vmem>>, vector<8x32xf32>,
    %42 = vector.extract_strided_slice %12 {offsets = [48, 0], sizes = [8, 32], strides = [1, 1]} : vector<64x32xf32> to vector<8x32xf32>
    %cst_22 = arith.constant dense<0.000000e+00> : vector<8x32xf32>
    %43 = tpu.matmul %40, %13, %cst_22 {dimension_numbers = #tpu.dot_dimension_numbers<[1], [0], [0], [1], [0, 0, 1, 1], [], []>} : vector<8x32xf32>, vector<32x32xf32>, vector<8x32xf32> -> vector<8x32xf32>
    %44 = arith.addf %42, %43 : vector<8x32xf32>
    %45 = math.tanh %44 : vector<8x32xf32>
    %c48 = arith.constant 48 : index
    %c0_23 = arith.constant 0 : index
    %46 = vector.load %arg9[%c48, %c0_23] : memref<64x32xf32, #tpu.memory_space<vmem>>, vector<8x32xf32>
    tpu.vector_store %arg9[%c48, %c0_23], %45 {strides = array<i32>} : memref<64x32xf32, #tpu.memory_space<vmem>>, vector<8x32xf32>,
    %47 = vector.extract_strided_slice %12 {offsets = [56, 0], sizes = [8, 32], strides = [1, 1]} : vector<64x32xf32> to vector<8x32xf32>
    %cst_24 = arith.constant dense<0.000000e+00> : vector<8x32xf32>
    %48 = tpu.matmul %45, %13, %cst_24 {dimension_numbers = #tpu.dot_dimension_numbers<[1], [0], [0], [1], [0, 0, 1, 1], [], []>} : vector<8x32xf32>, vector<32x32xf32>, vector<8x32xf32> -> vector<8x32xf32>
    %49 = arith.addf %47, %48 : vector<8x32xf32>
    %50 = math.tanh %49 : vector<8x32xf32>
    %c56 = arith.constant 56 : index
    %c0_25 = arith.constant 0 : index
    %51 = vector.load %arg9[%c56, %c0_25] : memref<64x32xf32, #tpu.memory_space<vmem>>, vector<8x32xf32>
    tpu.vector_store %arg9[%c56, %c0_25], %50 {strides = array<i32>} : memref<64x32xf32, #tpu.memory_space<vmem>>, vector<8x32xf32>,
    %c0_26 = arith.constant 0 : index
    %c0_27 = arith.constant 0 : index
    %52 = vector.load %arg9[%c0_26, %c0_27] : memref<64x32xf32, #tpu.memory_space<vmem>>, vector<64x32xf32>
    %c0_28 = arith.constant 0 : index
    %c0_29 = arith.constant 0 : index
    %53 = vector.load %arg5[%c0_28, %c0_29] : memref<32x16xf32, #tpu.memory_space<vmem>>, vector<32x16xf32>
    %cst_30 = arith.constant dense<0.000000e+00> : vector<64x16xf32>
    %54 = tpu.matmul %52, %53, %cst_30 {dimension_numbers = #tpu.dot_dimension_numbers<[1], [0], [0], [1], [0, 0, 1, 1], [], []>} : vector<64x32xf32>, vector<32x16xf32>, vector<64x16xf32> -> vector<64x16xf32>
    %c0_31 = arith.constant 0 : index
    %c0_32 = arith.constant 0 : index
    %55 = vector.load %arg6[%c0_31, %c0_32] : memref<1x16xf32, #tpu.memory_space<vmem>>, vector<1x16xf32>
    %56 = vector.broadcast %55 : vector<1x16xf32> to vector<64x16xf32>
    %57 = arith.addf %54, %56 : vector<64x16xf32>
    %c0_33 = arith.constant 0 : index
    %c0_34 = arith.constant 0 : index
    %58 = vector.load %arg7[%c0_33, %c0_34] : memref<64x16xf32, #tpu.memory_space<vmem>>, vector<64x16xf32>
    tpu.vector_store %arg7[%c0_33, %c0_34], %57 {strides = array<i32>} : memref<64x16xf32, #tpu.memory_space<vmem>>, vector<64x16xf32>,
    %c0_35 = arith.constant 0 : index
    %c0_36 = arith.constant 0 : index
    %59 = vector.load %arg8[%c0_35, %c0_36] : memref<8x32xf32, #tpu.memory_space<vmem>>, vector<8x32xf32>
    tpu.vector_store %arg8[%c0_35, %c0_36], %50 {strides = array<i32>} : memref<8x32xf32, #tpu.memory_space<vmem>>, vector<8x32xf32>,
    return
  }
}

</mosaic_0001>

<bundles_post_ra>
// kernel: _lambda_.1
= control target key start
LH: loop header
LB: loop body
LE: loop exit
PB: predicated region body
PF: predicated region fallthrough
CT: control target
= control target key end

     0   :  { %14 = vsyncpa [#allocation4], 0  ;;  %s1492_s27 = smov [#allocation3]   ;;  %s1745_s0 = inlined_call_operand.vmem [shape: s32[64,1], index: 0, kind: input, shape index: {}]   ;;  %s1746_s1 = inlined_call_operand.hbm [shape: f32[128,32], index: 1, kind: input, shape index: {}]   ;;  %s1747_s2 = inlined_call_operand.vmem [shape: f32[32,32], index: 2, kind: input, shape index: {}]   ;;  %s1748_s3 = inlined_call_operand.vmem [shape: f32[32,32], index: 3, kind: input, shape index: {}]   ;;  %s1749_s4 = inlined_call_operand.vmem [shape: f32[1,32], index: 4, kind: input, shape index: {}]   ;;  %s1750_s5 = inlined_call_operand.vmem [shape: f32[32,16], index: 5, kind: input, shape index: {}]   ;;  %s1751_s6 = inlined_call_operand.vmem [shape: f32[1,16], index: 6, kind: input, shape index: {}]   ;;  %s1752_s7 = inlined_call_operand.vmem [shape: f32[64,16], index: 7, kind: output, shape index: {0}]   ;;  %s1753_s8 = inlined_call_operand.vmem [shape: f32[8,32], index: 8, kind: output, shape index: {1}]  }
   0x1   :  { %s22_s28 = sshll.u32 %s1492_s27, 4  ;;  %s1468_s9 = scalar_lea.hbm %s1746_s1, 2048  ;;  %s23_s28 = int_to_ptr.vmem [resolvable:$true] %s22_s28 }
   0x2   :  { %p1469_p0 = scmp.ne.s32.totalorder %s1746_s1, %s1468_s9  ;;  %p1472_p1 = scmp.lt.u32.totalorder %s1468_s9, %s1746_s1 }
   0x4   :  { %p1474_p2 = pnand %p1472_p1, %p1469_p0 }
   0x6   :  { %1477 = shalt.err (!%p1474_p2)
}
   0x7   :  { %s1478_s14 = scalar_lea.vmem %s23_s28, 2048  ;;  %p1483_p4 = scmp.lt.s32.totalorder %s23_s28, %s23_s28 }
   0x8   :  { %p1479_p3 = scmp.ne.s32.totalorder %s23_s28, %s1478_s14  ;;  %p1484_p5 = scmp.lt.s32.totalorder %s1478_s14, %s1478_s14 }
   0xa   :  { %p1485_p6 = por %p1484_p5, %p1483_p4 }
   0xc   :  { %p1486_p7 = pnand %p1485_p6, %p1479_p3 }
   0xe   :  { %1489 = shalt.err (!%p1486_p7)
}
   0xf   :  { %s1493_s15 = smov 128   ;;  %s1494_s16 = smov 8  }
  0x10   :  { %28 = dma.hbm_to_vmem [thread:$0]  %s1746_s1, 2048, %s23_s28, [#allocation4], %s1493_s15, %s1493_s15, %s1494_s16  }
  0x11   :  { %1490 = dma.done.wait [#allocation4], 2048  }
  0x12   :  { %1491 = vsyncadd [#allocation4], 4294965248  ;;  %v1495_v0 = vmov 0   ;;  %v42_v1 = vld [vmem:[%s1745_s0] sm:$0xff]  ;;  %v44_v2 = vld [vmem:[%s1745_s0 + $0x10] sm:$0xff]  ;;  %v50_v39 = vlaneseq  ;;  %v1496_v43 = vmov 1.0  }
  0x13   :  { %1450 = vset.pattern.permute.xlu0 %v1495_v0  ;;  %1451 = vset.pattern.permute.xlu1 %v1495_v0  ;;  %v43_v3 = vld [vmem:[%s1745_s0 + $0x8] sm:$0xff]  ;;  %v45_v4 = vld [vmem:[%s1745_s0 + $0x18] sm:$0xff]  ;;  %v100_v5 = vld [vmem:[#allocation3] sm:$0xff]  ;;  %v1497_v52 = vmov 0.0|0.0   ;;  %vm232_vm8 = vcmask 261120   ;;  %vm1498_vm9 = vmmov 0  }
  0x14   :  { %53 = vperm.xlu0 %1450, %v42_v1   ;;  %59 = vperm.xlu1 %1451, %v44_v2   ;;  %v101_v6 = vld [vmem:[#allocation3 + $0x8] sm:$0xff]  ;;  %v102_v8 = vld [vmem:[#allocation3 + $0x10] sm:$0xff]  ;;  %v103_v9 = vld [vmem:[#allocation3 + $0x18] sm:$0xff]  ;;  %v51_v40 = vand.u32 127, %v50_v39  ;;  %v1499_v1 = vmov 0.0   ;;  %vm1048_vm10 = vcmask 130048  }
  0x15   :  { %v1352_v7 = vpack.c.bf16 %v101_v6, %v100_v5  ;;  %v1356_v10 = vpack.c.bf16 %v103_v9, %v102_v8  ;;  %v104_v11 = vld [vmem:[#allocation3 + $0x20] sm:$0xff]  ;;  %v105_v12 = vld [vmem:[#allocation3 + $0x28] sm:$0xff]  ;;  %v106_v16 = vld [vmem:[#allocation3 + $0x30] sm:$0xff] }
  0x16   :  { %v46_v13 = vld [vmem:[%s1745_s0 + $0x20] sm:$0xff]  ;;  %v47_v14 = vld [vmem:[%s1745_s0 + $0x28] sm:$0xff]  ;;  %v1360_v15 = vpack.c.bf16 %v105_v12, %v104_v11  ;;  %v107_v17 = vld [vmem:[#allocation3 + $0x38] sm:$0xff] }
  0x17   :  { %1353 = vmatprep.subr.bf16.mxu0 %v1352_v7  ;;  %v48_v18 = vld [vmem:[%s1745_s0 + $0x30] sm:$0xff]  ;;  %v1364_v19 = vpack.c.bf16 %v107_v17, %v106_v16  ;;  %v108_v20 = vld [vmem:[#allocation3 + $0x40] sm:$0xff]  ;;  %v109_v21 = vld [vmem:[#allocation3 + $0x48] sm:$0xff] }
  0x18   :  { %56 = vperm.xlu0 %1450, %v43_v3   ;;  %62 = vperm.xlu1 %1451, %v45_v4   ;;  %v49_v22 = vld [vmem:[%s1745_s0 + $0x38] sm:$0xff]  ;;  %v1368_v23 = vpack.c.bf16 %v109_v21, %v108_v20  ;;  %v221_v24 = vld [vmem:[%s1747_s2] sm:$0xff]  ;;  %v222_v25 = vld [vmem:[%s1747_s2 + $0x8] sm:$0xff] }
  0x19   :  { %1355 = vmatpush3.bf16.msra.mxu0 %v1352_v7  ;;  %v110_v26 = vld [vmem:[#allocation3 + $0x50] sm:$0xff]  ;;  %v111_v27 = vld [vmem:[#allocation3 + $0x58] sm:$0xff]  ;;  %v1384_v28 = vpack.c.bf16 %v222_v25, %v221_v24  ;;  %v112_v33 = vld [vmem:[#allocation3 + $0x60] sm:$0xff] }
  0x1a   :  { %1357 = vmatprep.subr.bf16.mxu0 %v1356_v10  ;;  %v223_v29 = vld [vmem:[%s1747_s2 + $0x10] sm:$0xff]  ;;  %v224_v30 = vld [vmem:[%s1747_s2 + $0x18] sm:$0xff]  ;;  %v1372_v32 = vpack.c.bf16 %v111_v27, %v110_v26  ;;  %v113_v34 = vld [vmem:[#allocation3 + $0x68] sm:$0xff] }
  0x1b   :  { %1385 = vmatprep.subr.bf16.mxu1 %v1384_v28  ;;  %v1388_v31 = vpack.c.bf16 %v224_v30, %v223_v29  ;;  %v1376_v35 = vpack.c.bf16 %v113_v34, %v112_v33  ;;  %v114_v36 = vld [vmem:[#allocation3 + $0x70] sm:$0xff]  ;;  %v115_v37 = vld [vmem:[#allocation3 + $0x78] sm:$0xff]  ;;  %v362_v50 = vld [vmem:[%s1748_s3] sm:$0xff] }
  0x1c   :  { %65 = vperm.xlu0 %1450, %v46_v13   ;;  %68 = vperm.xlu1 %1451, %v47_v14   ;;  %v1380_v38 = vpack.c.bf16 %v115_v37, %v114_v36  ;;  %v363_v51 = vld [vmem:[%s1748_s3 + $0x8] sm:$0xff]  ;;  %v364_v62 = vld [vmem:[%s1748_s3 + $0x10] sm:$0xff]  ;;  %v365_v63 = vld [vmem:[%s1748_s3 + $0x18] sm:$0xff] }
  0x1d   :  { %1359 = vmatpush3.bf16.msra.mxu0 %v1356_v10  ;;  %1387 = vmatpush3.bf16.msra.mxu1 %v1384_v28  ;;  %v1600_v53 = vpack.c.bf16 %v363_v51, %v362_v50  ;;  %v1621_v0 = vpack.c.bf16 %v365_v63, %v364_v62  ;;  %v1083_v2 = vld [vmem:[%s1749_s4] ss:$0 sm:$0xff]  ;;  %v909_v37 = vld [vmem:[%s1750_s5 + $0x8] sm:$0xff] }
  0x1e   :  { %1361 = vmatprep.subr.bf16.mxu0 %v1360_v15  ;;  %1389 = vmatprep.subr.bf16.mxu1 %v1388_v31  ;;  %v908_v36 = vld [vmem:[%s1750_s5] sm:$0xff] }
  0x20   :  { %71 = vperm.xlu0 %1450, %v48_v18   ;;  %74 = vperm.xlu1 %1451, %v49_v22  }
  0x21   :  { %1363 = vmatpush3.bf16.msra.mxu0 %v1360_v15  ;;  %1391 = vmatpush3.bf16.msra.mxu1 %v1388_v31 }
  0x22   :  { %1365 = vmatprep.subr.bf16.mxu0 %v1364_v19  ;;  %1392 = vmatprep.subr.bf16.mxu1 %v1497_v52 }
  0x25   :  { %1367 = vmatpush3.bf16.msra.mxu0 %v1364_v19 }
  0x26   :  { %1369 = vmatprep.subr.bf16.mxu0 %v1368_v23 }
  0x29   :  { %1371 = vmatpush3.bf16.msra.mxu0 %v1368_v23 }
  0x2a   :  { %1373 = vmatprep.subr.bf16.mxu0 %v1372_v32 }
  0x2d   :  { %1375 = vmatpush3.bf16.msra.mxu0 %v1372_v32 }
  0x2e   :  { %1377 = vmatprep.subr.bf16.mxu0 %v1376_v35 }
  0x31   :  { %1379 = vmatpush3.bf16.msra.mxu0 %v1376_v35 }
  0x32   :  { %1381 = vmatprep.subr.bf16.mxu0 %v1380_v38 }
  0x35   :  { %1383 = vmatpush3.bf16.msra.mxu0 %v1380_v38  ;;  %v1434_v38 = vpack.c.bf16 %v909_v37, %v908_v36 }
  0x36   :  { %1422 = vmatprep.subr.bf16.mxu0 %v1497_v52 }
  0x93   :  { %v54_v41 = vpop.permute.xlu0 %53  ;;  %v60_v42 = vpop.permute.xlu1 %59 }
  0x94   :  { %vm76_vm0 = vcmp.eq.s32.totalorder %v51_v40, %v54_v41  ;;  %vm78_vm1 = vcmp.eq.s32.totalorder %v51_v40, %v60_v42  ;;  %v910_v42 = vld [vmem:[%s1750_s5 + $0x10] sm:$0xff] }
  0x95   :  { %1223 = vmatprep.mubr.msk.f32.mxu0 %vm76_vm0, %v1496_v43 }
  0x97   :  { %v57_v44 = vpop.permute.xlu0 %56  ;;  %v63_v45 = vpop.permute.xlu1 %62 }
  0x98   :  { %vm77_vm2 = vcmp.eq.s32.totalorder %v51_v40, %v57_v44  ;;  %vm79_vm3 = vcmp.eq.s32.totalorder %v51_v40, %v63_v45 }
  0x99   :  { %1224 = vmatmul.mubr.msk.f32.vlgmr.msra.gmra.mrb[0].mxu0 %vm77_vm2, %v1496_v43 }
  0x9a   :  { %1226 = vmatprep.mubr.msk.f32.mxu0 %vm78_vm1, %v1496_v43  ;;  %1424 = vmatpush3.bf16.msra.mxu0 %v1600_v53 }
  0x9b   :  { %v66_v46 = vpop.permute.xlu0 %65  ;;  %v69_v47 = vpop.permute.xlu1 %68  ;;  %1425 = vmatprep.subr.bf16.mxu0 %v1497_v52 }
  0x9c   :  { %vm80_vm4 = vcmp.eq.s32.totalorder %v51_v40, %v66_v46  ;;  %vm81_vm5 = vcmp.eq.s32.totalorder %v51_v40, %v69_v47 }
  0x9d   :  { %1227 = vmatmul.mubr.msk.f32.gmra.mrb[2].mxu0 %vm79_vm3, %v1496_v43 }
  0x9e   :  { %1229 = vmatprep.mubr.msk.f32.mxu0 %vm80_vm4, %v1496_v43  ;;  %1427 = vmatpush3.bf16.msra.mxu0 %v1621_v0 }
  0x9f   :  { %v72_v48 = vpop.permute.xlu0 %71  ;;  %v75_v49 = vpop.permute.xlu1 %74  ;;  %1435 = vmatprep.subr.bf16.mxu0 %v1434_v38 }
  0xa0   :  { %vm82_vm6 = vcmp.eq.s32.totalorder %v51_v40, %v72_v48  ;;  %vm83_vm7 = vcmp.eq.s32.totalorder %v51_v40, %v75_v49 }
  0xa1   :  { %1230 = vmatmul.mubr.msk.f32.gmra.mrb[4].mxu0 %vm81_vm5, %v1496_v43 }
  0xa2   :  { %1232 = vmatprep.mubr.msk.f32.mxu0 %vm82_vm6, %v1496_v43 }
  0xa5   :  { %1233 = vmatmul.mubr.msk.f32.gmra.mrb[6].mxu0 %vm83_vm7, %v1496_v43  ;;  %v911_v43 = vld [vmem:[%s1750_s5 + $0x18] sm:$0xff] }
  0xa6   :  { %1318 = vmatprep.mubr.msk.f32.mxu0 %vm1498_vm9, %v1499_v1  ;;  %v1438_v44 = vpack.c.bf16 %v911_v43, %v910_v42 }
 0x16c   :  { %v1225_v54 = vpop.f32.mrb[0].mxu0 }
 0x16d   :  { %v182_v55 = vpop.f32.mrb[1].mxu0 }
 0x16e   :  { %1243 = vmatprep.mubr.msk.f32.mxu1 %vm232_vm8, %v182_v55  ;;  %v1099_v55 = vld [vmem:[%s1751_s6] ss:$0 sm:$0xff] }
 0x16f   :  { %1244 = vmatmul.mubr.msk.f32.vlgmr.msra.gmra.mrb[0].mxu1 %vm232_vm8, %v1225_v54 }
 0x170   :  { %v1228_v56 = vpop.f32.mrb[2].mxu0  ;;  %1394 = vmatpush3.bf16.msra.mxu1 %v1600_v53 }
 0x171   :  { %v192_v57 = vpop.f32.mrb[3].mxu0  ;;  %1395 = vmatprep.subr.bf16.mxu1 %v1497_v52 }
 0x172   :  { %1246 = vmatprep.mubr.msk.f32.mxu1 %vm232_vm8, %v192_v57 }
 0x173   :  { %1247 = vmatmul.mubr.msk.f32.gmra.mrb[2].mxu1 %vm232_vm8, %v1228_v56 }
 0x174   :  { %v1231_v58 = vpop.f32.mrb[4].mxu0  ;;  %1397 = vmatpush3.bf16.msra.mxu1 %v1621_v0 }
 0x175   :  { %v202_v59 = vpop.f32.mrb[5].mxu0  ;;  %1398 = vmatprep.subr.bf16.mxu1 %v1497_v52 }
 0x176   :  { %1249 = vmatprep.mubr.msk.f32.mxu1 %vm232_vm8, %v202_v59 }
 0x177   :  { %1250 = vmatmul.mubr.msk.f32.gmra.mrb[4].mxu1 %vm232_vm8, %v1231_v58 }
 0x178   :  { %v1234_v60 = vpop.f32.mrb[6].mxu0 }
 0x179   :  { %v212_v61 = vpop.f32.mrb[7].mxu0 }
 0x17a   :  { %1252 = vmatprep.mubr.msk.f32.mxu1 %vm232_vm8, %v212_v61 }
 0x17b   :  { %1253 = vmatmul.mubr.msk.f32.gmra.mrb[6].mxu1 %vm232_vm8, %v1234_v60 }
 0x17c   :  { %1263 = vmatprep.mubr.msk.f32.mxu1 %vm1498_vm9, %v1499_v1 }
 0x242   :  { %v1245_v3 = vpop.f32.mrb[0].mxu1 }
 0x243   :  { %v329_v4 = vadd.f32 %v1245_v3, %v1083_v2  ;;  %v323_v5 = vpop.f32.mrb[1].mxu1 }
 0x244   :  { %v324_v6 = vadd.f32 %v1083_v2, %v323_v5 }
 0x246   :  { %1452 = vtanh.f32 %v324_v6  ;;  %v1248_v7 = vpop.f32.mrb[2].mxu1 }
 0x247   :  { %v339_v8 = vadd.f32 %v1248_v7, %v1083_v2  ;;  %v333_v9 = vpop.f32.mrb[3].mxu1 }
 0x248   :  { %v334_v10 = vadd.f32 %v1083_v2, %v333_v9 }
 0x24a   :  { %v1251_v11 = vpop.f32.mrb[4].mxu1 }
 0x24b   :  { %v1633_v12 = vadd.f32 %v1251_v11, %v1083_v2  ;;  %v343_v13 = vpop.f32.mrb[5].mxu1 }
 0x24c   :  { %v344_v14 = vadd.f32 %v1083_v2, %v343_v13 }
 0x24e   :  { %v1254_v15 = vpop.f32.mrb[6].mxu1 }
 0x24f   :  { %v1635_v16 = vadd.f32 %v1254_v15, %v1083_v2  ;;  %v353_v17 = vpop.f32.mrb[7].mxu1 }
 0x250   :  { %v1453_v18 = vpop.eup %1452  ;;  %v1637_v19 = vadd.f32 %v1083_v2, %v353_v17 }
 0x251   :  { %367 = vst.msk [vmem:[#allocation2] sm:$0xff] %vm232_vm8, %v1453_v18  ;;  %1264 = vmatmul.mubr.msk.f32.vlgmr.msra.gmra.mrb[8].mxu1 %vm232_vm8, %v1453_v18 }
 0x252   :  { %1400 = vmatpush3.bf16.msra.mxu1 %v1600_v53  ;;  %1274 = vmatprep.mubr.msk.f32.mxu1 %vm1498_vm9, %v1499_v1 }
 0x253   :  { %1401 = vmatprep.subr.bf16.mxu1 %v1497_v52 }
 0x256   :  { %1403 = vmatpush3.bf16.msra.mxu1 %v1621_v0 }
 0x257   :  { %1404 = vmatprep.subr.bf16.mxu1 %v1497_v52 }
 0x258   :  { %v900_v46 = vld [vmem:[#allocation2] sm:$0xff] }
 0x324   :  { %v437_v20 = vpop.f32.mrb[8].mxu1 }
 0x325   :  { %v441_v21 = vadd.f32 %v437_v20, %v329_v4  ;;  %v1265_v22 = vpop.f32.mrb[9].mxu1 }
 0x327   :  { %1454 = vtanh.f32 %v441_v21 }
 0x331   :  { %v1455_v23 = vpop.eup %1454 }
 0x332   :  { %443 = vst.msk [vmem:[#allocation2 + $0x8] sm:$0xff] %vm232_vm8, %v1455_v23  ;;  %1275 = vmatmul.mubr.msk.f32.vlgmr.msra.gmra.mrb[10].mxu1 %vm232_vm8, %v1455_v23 }
 0x333   :  { %1406 = vmatpush3.bf16.msra.mxu1 %v1600_v53  ;;  %1285 = vmatprep.mubr.msk.f32.mxu1 %vm1498_vm9, %v1499_v1 }
 0x334   :  { %1407 = vmatprep.subr.bf16.mxu1 %v1497_v52 }
 0x337   :  { %1409 = vmatpush3.bf16.msra.mxu1 %v1621_v0 }
 0x338   :  { %1410 = vmatprep.subr.bf16.mxu1 %v1497_v52 }
 0x339   :  { %v901_v47 = vld [vmem:[#allocation2 + $0x8] sm:$0xff] }
 0x405   :  { %v513_v24 = vpop.f32.mrb[10].mxu1 }
 0x406   :  { %v517_v25 = vadd.f32 %v513_v24, %v334_v10  ;;  %v1276_v26 = vpop.f32.mrb[11].mxu1 }
 0x408   :  { %1456 = vtanh.f32 %v517_v25 }
 0x412   :  { %v1457_v27 = vpop.eup %1456 }
 0x413   :  { %519 = vst.msk [vmem:[#allocation2 + $0x10] sm:$0xff] %vm232_vm8, %v1457_v27  ;;  %1286 = vmatmul.mubr.msk.f32.vlgmr.msra.gmra.mrb[12].mxu1 %vm232_vm8, %v1457_v27 }
 0x414   :  { %1412 = vmatpush3.bf16.msra.mxu1 %v1600_v53  ;;  %1296 = vmatprep.mubr.msk.f32.mxu1 %vm1498_vm9, %v1499_v1 }
 0x415   :  { %1413 = vmatprep.subr.bf16.mxu1 %v1497_v52 }
 0x418   :  { %1415 = vmatpush3.bf16.msra.mxu1 %v1621_v0 }
 0x419   :  { %1416 = vmatprep.subr.bf16.mxu1 %v1497_v52 }
 0x41a   :  { %v902_v48 = vld [vmem:[#allocation2 + $0x10] sm:$0xff] }
 0x4e6   :  { %v589_v28 = vpop.f32.mrb[12].mxu1 }
 0x4e7   :  { %v593_v29 = vadd.f32 %v589_v28, %v339_v8  ;;  %v1287_v30 = vpop.f32.mrb[13].mxu1 }
 0x4e9   :  { %1458 = vtanh.f32 %v593_v29 }
 0x4f3   :  { %v1459_v31 = vpop.eup %1458 }
 0x4f4   :  { %595 = vst.msk [vmem:[#allocation2 + $0x18] sm:$0xff] %vm232_vm8, %v1459_v31  ;;  %1297 = vmatmul.mubr.msk.f32.vlgmr.msra.gmra.mrb[14].mxu1 %vm232_vm8, %v1459_v31 }
 0x4f5   :  { %1418 = vmatpush3.bf16.msra.mxu1 %v1600_v53  ;;  %1307 = vmatprep.mubr.msk.f32.mxu1 %vm1498_vm9, %v1499_v1 }
 0x4f6   :  { %1419 = vmatprep.subr.bf16.mxu1 %v1497_v52 }
 0x4f9   :  { %1421 = vmatpush3.bf16.msra.mxu1 %v1621_v0 }
 0x4fa   :  { %1428 = vmatprep.subr.bf16.mxu1 %v1497_v52 }
 0x4fb   :  { %v903_v49 = vld [vmem:[#allocation2 + $0x18] sm:$0xff] }
 0x5c7   :  { %v665_v32 = vpop.f32.mrb[14].mxu1 }
 0x5c8   :  { %v669_v33 = vadd.f32 %v665_v32, %v344_v14  ;;  %v1298_v34 = vpop.f32.mrb[15].mxu1 }
 0x5ca   :  { %1460 = vtanh.f32 %v669_v33 }
 0x5d4   :  { %v1461_v35 = vpop.eup %1460 }
 0x5d5   :  { %671 = vst.msk [vmem:[#allocation2 + $0x20] sm:$0xff] %vm232_vm8, %v1461_v35  ;;  %1308 = vmatmul.mubr.msk.f32.vlgmr.msra.gmra.mrb[16].mxu1 %vm232_vm8, %v1461_v35 }
 0x5d6   :  { %1430 = vmatpush3.bf16.msra.mxu1 %v1600_v53  ;;  %1329 = vmatprep.mubr.msk.f32.mxu1 %vm1498_vm9, %v1499_v1 }
 0x5d7   :  { %1431 = vmatprep.subr.bf16.mxu1 %v1497_v52 }
 0x5da   :  { %1433 = vmatpush3.bf16.msra.mxu1 %v1621_v0 }
 0x5dc   :  { %v904_v50 = vld [vmem:[#allocation2 + $0x20] sm:$0xff] }
 0x6a8   :  { %v741_v39 = vpop.f32.mrb[16].mxu1 }
 0x6a9   :  { %v745_v40 = vadd.f32 %v741_v39, %v1633_v12  ;;  %v1309_v41 = vpop.f32.mrb[17].mxu1 }
 0x6ab   :  { %1462 = vtanh.f32 %v745_v40 }
 0x6b5   :  { %v1463_v45 = vpop.eup %1462 }
 0x6b6   :  { %747 = vst.msk [vmem:[#allocation2 + $0x28] sm:$0xff] %vm232_vm8, %v1463_v45  ;;  %1319 = vmatmul.mubr.msk.f32.vlgmr.msra.gmra.mrb[8].mxu0 %vm232_vm8, %v1463_v45 }
 0x6b7   :  { %1437 = vmatpush3.bf16.msra.mxu0 %v1434_v38  ;;  %1340 = vmatprep.mubr.msk.f32.mxu0 %vm232_vm8, %v900_v46 }
 0x6b8   :  { %1439 = vmatprep.subr.bf16.mxu0 %v1438_v44 }
 0x6bb   :  { %1441 = vmatpush3.bf16.msra.mxu0 %v1438_v44 }
 0x6bd   :  { %v905_v51 = vld [vmem:[#allocation2 + $0x28] sm:$0xff] }
 0x6be   :  { %1341 = vmatmul.mubr.msk.f32.vlgmr.msra.gmra.mrb[10].mxu0 %vm232_vm8, %v901_v47 }
 0x6bf   :  { %1343 = vmatprep.mubr.msk.f32.mxu0 %vm232_vm8, %v902_v48 }
 0x6c2   :  { %1344 = vmatmul.mubr.msk.f32.gmra.mrb[12].mxu0 %vm232_vm8, %v903_v49 }
 0x6c3   :  { %1346 = vmatprep.mubr.msk.f32.mxu0 %vm232_vm8, %v904_v50 }
 0x6c6   :  { %1347 = vmatmul.mubr.msk.f32.gmra.mrb[14].mxu0 %vm232_vm8, %v905_v51 }
 0x789   :  { %v817_v52 = vpop.f32.mrb[8].mxu0 }
 0x78a   :  { %v821_v53 = vadd.f32 %v817_v52, %v1637_v19  ;;  %v1320_v54 = vpop.f32.mrb[9].mxu0 }
 0x78c   :  { %1464 = vtanh.f32 %v821_v53 }
 0x791   :  { %v1342_v56 = vpop.f32.mrb[10].mxu0 }
 0x792   :  { %v1015_v57 = vadd.f32 %v1342_v56, %v1099_v55  ;;  %v1009_v58 = vpop.f32.mrb[11].mxu0 }
 0x793   :  { %v1010_v59 = vadd.f32 %v1099_v55, %v1009_v58 }
 0x794   :  { %1050 = vst.msk [vmem:[%s1752_s7 + $0x8] sm:$0xff] %vm1048_vm10, %v1015_v57 }
 0x795   :  { %1049 = vst.msk [vmem:[%s1752_s7] sm:$0xff] %vm1048_vm10, %v1010_v59  ;;  %v1345_v60 = vpop.f32.mrb[12].mxu0 }
 0x796   :  { %v1465_v61 = vpop.eup %1464  ;;  %v1025_v62 = vadd.f32 %v1345_v60, %v1099_v55  ;;  %v1019_v63 = vpop.f32.mrb[13].mxu0 }
 0x797   :  { %823 = vst.msk [vmem:[#allocation2 + $0x30] sm:$0xff] %vm232_vm8, %v1465_v61  ;;  %v1020_v0 = vadd.f32 %v1099_v55, %v1019_v63  ;;  %1330 = vmatmul.mubr.msk.f32.vlgmr.msra.gmra.mrb[18].mxu1 %vm232_vm8, %v1465_v61 }
 0x798   :  { %1052 = vst.msk [vmem:[%s1752_s7 + $0x18] sm:$0xff] %vm1048_vm10, %v1025_v62 }
 0x799   :  { %1051 = vst.msk [vmem:[%s1752_s7 + $0x10] sm:$0xff] %vm1048_vm10, %v1020_v0  ;;  %v1348_v1 = vpop.f32.mrb[14].mxu0 }
 0x79a   :  { %v1035_v2 = vadd.f32 %v1348_v1, %v1099_v55  ;;  %v1029_v3 = vpop.f32.mrb[15].mxu0 }
 0x79b   :  { %v1030_v4 = vadd.f32 %v1099_v55, %v1029_v3 }
 0x79c   :  { %1054 = vst.msk [vmem:[%s1752_s7 + $0x28] sm:$0xff] %vm1048_vm10, %v1035_v2 }
 0x79d   :  { %1053 = vst.msk [vmem:[%s1752_s7 + $0x20] sm:$0xff] %vm1048_vm10, %v1030_v4 }
 0x79e   :  { %v906_v5 = vld [vmem:[#allocation2 + $0x30] sm:$0xff] }
 0x79f   :  { %1349 = vmatprep.mubr.msk.f32.mxu0 %vm232_vm8, %v906_v5 }
 0x86a   :  { %v893_v6 = vpop.f32.mrb[18].mxu1 }
 0x86b   :  { %v897_v7 = vadd.f32 %v893_v6, %v1635_v16  ;;  %v1331_v8 = vpop.f32.mrb[19].mxu1 }
 0x86d   :  { %1466 = vtanh.f32 %v897_v7 }
 0x877   :  { %v1467_v9 = vpop.eup %1466 }
 0x878   :  { %899 = vst.msk [vmem:[#allocation2 + $0x38] sm:$0xff] %vm232_vm8, %v1467_v9  ;;  %1057 = vst.msk [vmem:[%s1753_s8] sm:$0xff] %vm232_vm8, %v1467_v9 }
 0x87f   :  { %v907_v10 = vld [vmem:[#allocation2 + $0x38] sm:$0xff] }
 0x880   :  { %1350 = vmatmul.mubr.msk.f32.gmra.mrb[16].mxu0 %vm232_vm8, %v907_v10 }
 0x953   :  { %v1351_v11 = vpop.f32.mrb[16].mxu0 }
 0x954   :  { %v1045_v12 = vadd.f32 %v1351_v11, %v1099_v55  ;;  %v1039_v13 = vpop.f32.mrb[17].mxu0 }
 0x955   :  { %v1040_v14 = vadd.f32 %v1099_v55, %v1039_v13 }
 0x956   :  { %1056 = vst.msk [vmem:[%s1752_s7 + $0x38] sm:$0xff] %vm1048_vm10, %v1045_v12 }
 0x957   :  { %1055 = vst.msk [vmem:[%s1752_s7 + $0x30] sm:$0xff] %vm1048_vm10, %v1040_v14 }
 0x958   :  { %1066 = vsyncpa [#allocation4], 1 }

</bundles_post_ra>
